<compile_context>
chip_gen: v7x
topology: tpu7x:2x2x1
jax: 0.10.0
libtpu: 0.0.40
codegen_flags: <defaults>
</compile_context>

<pallas_src>
import jax
import jax.numpy as jnp
from jax.experimental import pallas as pl
from jax.experimental.pallas import tpu as pltpu

EPS = 1e-5

# Per-step pipelined buffers = 2 (double buffer) x (input block + output block).
# 24 MiB of buffers leaves headroom under the smallest physical VMEM (v7x: 64 MiB).
_VMEM_BUF_BUDGET = 24 << 20
# Raise the default scoped VMEM limit (v5e 16 MiB, v6e/v7x 32 MiB) so the large
# tiles are accepted; 48 MiB still leaves headroom on v7x.
_VMEM_LIMIT_BYTES = 48 << 20


def _ncc_layernorm_kernel(x_ref, w_ref, b_ref, o_ref, *, eps, hidden):
    x = x_ref[...].astype(jnp.float32)                 # (TR, H)
    n = float(hidden)

    # Fused single-pass reduction: sum(x) and sum(x*x) over the same sweep.
    s1 = jnp.sum(x, axis=-1, keepdims=True)            # (TR, 1)
    s2 = jnp.sum(x * x, axis=-1, keepdims=True)        # (TR, 1)
    mean = s1 / n
    # Unbiased variance (torch.std default): divide by N-1.  Clamp tiny
    # negatives from cancellation in the one-pass formula (f32 accumulation).
    # NOTE: H == 1 gives NaN, identical to torch.std on a single element.
    var = jnp.maximum((s2 - s1 * mean) / (n - 1.0), 0.0)
    std = jnp.sqrt(var)

    # Per-row reciprocal on (TR, 1) instead of a full (TR, H) VPU divide.
    # approx=False keeps exact numerics (the win is shrinking the divide,
    # not approximating it).
    inv = pl.reciprocal(std + eps, approx=False)

    w = w_ref[...].astype(jnp.float32)                 # (1, H)
    b = b_ref[...].astype(jnp.float32)                 # (1, H)
    out = w * ((x - mean) * inv) + b
    o_ref[...] = out.astype(o_ref.dtype)


def _choose_row_tile(rows, hidden, dtype_bytes):
    """Largest row tile whose double-buffered in+out blocks fit the VMEM budget."""
    per_row_bytes = 4 * hidden * dtype_bytes           # 2 bufs x (in + out)
    max_tr = max(1, _VMEM_BUF_BUDGET // per_row_bytes)
    if rows <= max_tr:
        return rows                                    # single whole-array block
    # Sublane-packing multiple: 8 for f32, 16 for bf16, 32 for int8/fp8.
    sub = max(8, 32 // max(1, dtype_bytes))
    tr = max(sub, (max_tr // sub) * sub)
    # Prefer a tile that divides `rows` exactly (no masked remainder block).
    t = tr
    while t >= sub:
        if rows % t == 0:
            return t
        t -= sub
    return tr   # no aligned divisor; rows are independent, Pallas masks the remainder.


def ncc_layer_norm(x, weight, bias, eps=EPS):
    """x: [..., H]; weight/bias: [H]. Returns the same shape/dtype as x."""
    orig_shape = x.shape
    h = orig_shape[-1]
    rows = 1
    for s in orig_shape[:-1]:
        rows *= s
    x2 = x.reshape(rows, h)
    w2 = weight.reshape(1, h)
    b2 = bias.reshape(1, h)

    tr = _choose_row_tile(rows, h, x2.dtype.itemsize)
    grid = (pl.cdiv(rows, tr),)

    # TODO(synk): for H < 128 stores are lane-masked (vst.msk); a fully
    # lane-dense layout would need packing rows into the lane dimension, which
    # changes the per-row reduction structure.

    kernel = lambda xr, wr, br, orf: _ncc_layernorm_kernel(
        xr, wr, br, orf, eps=eps, hidden=h)

    out2 = pl.pallas_call(
        kernel,
        out_shape=jax.ShapeDtypeStruct((rows, h), x.dtype),
        grid_spec=pltpu.PrefetchScalarGridSpec(
            num_scalar_prefetch=0,
            grid=grid,
            in_specs=[
                pl.BlockSpec((tr, h), lambda i: (i, 0)),
                pl.BlockSpec((1, h), lambda i: (0, 0)),
                pl.BlockSpec((1, h), lambda i: (0, 0)),
            ],
            out_specs=pl.BlockSpec((tr, h), lambda i: (i, 0)),
        ),
        compiler_params=pltpu.CompilerParams(
            dimension_semantics=("parallel",),
            vmem_limit_bytes=_VMEM_LIMIT_BYTES,
        ),
    )(x2, w2, b2)
    return out2.reshape(orig_shape)


def _reference(x, weight, bias, eps=EPS):
    xf = x.astype(jnp.float32)
    mean = jnp.mean(xf, axis=-1, keepdims=True)
    var = jnp.sum((xf - mean) ** 2, axis=-1, keepdims=True) / (xf.shape[-1] - 1)
    std = jnp.sqrt(var)
    return (weight * (xf - mean) / (std + eps) + bias).astype(x.dtype)


if __name__ == "__main__":
    key = jax.random.PRNGKey(0)
    batch, seq, hidden = 2, 8, 32
    x = jax.random.normal(key, (batch, seq, hidden), dtype=jnp.float32)

    # deterministic parameter init, matching the module: constant(1.0) for both
    weight = jnp.ones((hidden,), dtype=jnp.float32)
    bias = jnp.ones((hidden,), dtype=jnp.float32)

    out = ncc_layer_norm(x, weight, bias)
    out = jax.block_until_ready(out)

    ref = _reference(x, weight, bias)
    assert out.shape == x.shape
    assert jnp.allclose(out, ref, atol=1e-5, rtol=1e-5), "mismatch vs reference"
    print("KERNEL_OK")
</pallas_src>

<mosaic_0001>
module attributes {stable_mosaic.version = 11 : i64} {
  func.func @_lambda_(%arg0: i32, %arg1: memref<16x32xf32, #tpu.memory_space<vmem>>, %arg2: memref<1x32xf32, #tpu.memory_space<vmem>>, %arg3: memref<1x32xf32, #tpu.memory_space<vmem>>, %arg4: memref<16x32xf32, #tpu.memory_space<vmem>>) attributes {dimension_semantics = [#tpu.dimension_semantics<parallel>], iteration_bounds = array<i64: 1>, scalar_prefetch = 0 : i64, scratch_operands = 0 : i64, tpu.core_type = #tpu.core_type<tc>, window_params = [{transform_indices = @transform_0, window_bounds = array<i64: 16, 32>}, {pipeline_mode = #tpu.pipeline_mode<synchronous>, transform_indices = @transform_1, window_bounds = array<i64: 1, 32>}, {pipeline_mode = #tpu.pipeline_mode<synchronous>, transform_indices = @transform_2, window_bounds = array<i64: 1, 32>}, {transform_indices = @transform_3, window_bounds = array<i64: 16, 32>}]} {
    %c0 = arith.constant 0 : index
    %c0_0 = arith.constant 0 : index
    %0 = vector.load %arg1[%c0, %c0_0] : memref<16x32xf32, #tpu.memory_space<vmem>>, vector<16x32xf32>
    %cst = arith.constant dense<0.000000e+00> : vector<16xf32>
    %1 = vector.multi_reduction <add>, %0, %cst [1] : vector<16x32xf32> to vector<16xf32>
    %2 = vector.shape_cast %1 : vector<16xf32> to vector<16x1xf32>
    %3 = arith.mulf %0, %0 : vector<16x32xf32>
    %cst_1 = arith.constant dense<0.000000e+00> : vector<16xf32>
    %4 = vector.multi_reduction <add>, %3, %cst_1 [1] : vector<16x32xf32> to vector<16xf32>
    %5 = vector.shape_cast %4 : vector<16xf32> to vector<16x1xf32>
    %cst_2 = arith.constant 3.200000e+01 : f32
    %6 = vector.broadcast %cst_2 : f32 to vector<16x1xf32>
    %7 = arith.divf %2, %6 : vector<16x1xf32>
    %8 = arith.mulf %2, %7 : vector<16x1xf32>
    %9 = arith.subf %5, %8 : vector<16x1xf32>
    %cst_3 = arith.constant 3.100000e+01 : f32
    %10 = vector.broadcast %cst_3 : f32 to vector<16x1xf32>
    %11 = arith.divf %9, %10 : vector<16x1xf32>
    %cst_4 = arith.constant 0.000000e+00 : f32
    %12 = vector.broadcast %cst_4 : f32 to vector<16x1xf32>
    %13 = arith.maximumf %11, %12 : vector<16x1xf32>
    %14 = math.sqrt %13 : vector<16x1xf32>
    %cst_5 = arith.constant 9.99999974E-6 : f32
    %15 = vector.broadcast %cst_5 : f32 to vector<16x1xf32>
    %16 = arith.addf %14, %15 : vector<16x1xf32>
    %17 = tpu.reciprocal %16 : vector<16x1xf32> -> vector<16x1xf32>
    %c0_6 = arith.constant 0 : index
    %c0_7 = arith.constant 0 : index
    %18 = vector.load %arg2[%c0_6, %c0_7] : memref<1x32xf32, #tpu.memory_space<vmem>>, vector<1x32xf32>
    %c0_8 = arith.constant 0 : index
    %c0_9 = arith.constant 0 : index
    %19 = vector.load %arg3[%c0_8, %c0_9] : memref<1x32xf32, #tpu.memory_space<vmem>>, vector<1x32xf32>
    %20 = vector.broadcast %7 : vector<16x1xf32> to vector<16x32xf32>
    %21 = arith.subf %0, %20 : vector<16x32xf32>
    %22 = vector.broadcast %17 : vector<16x1xf32> to vector<16x32xf32>
    %23 = arith.mulf %21, %22 : vector<16x32xf32>
    %24 = vector.broadcast %18 : vector<1x32xf32> to vector<16x32xf32>
    %25 = arith.mulf %24, %23 : vector<16x32xf32>
    %26 = vector.broadcast %19 : vector<1x32xf32> to vector<16x32xf32>
    %27 = arith.addf %25, %26 : vector<16x32xf32>
    %c0_10 = arith.constant 0 : index
    %c0_11 = arith.constant 0 : index
    %28 = vector.load %arg4[%c0_10, %c0_11] : memref<16x32xf32, #tpu.memory_space<vmem>>, vector<16x32xf32>
    tpu.vector_store %arg4[%c0_10, %c0_11], %27 {strides = array<i32>} : memref<16x32xf32, #tpu.memory_space<vmem>>, vector<16x32xf32>,
    return
  }
  func.func @transform_0(%arg0: i32) -> (i32, i32) {
    %c0_i32 = arith.constant 0 : i32
    %c0_i32_0 = arith.constant 0 : i32
    return %arg0, %c0_i32 : i32, i32
  }
  func.func @transform_1(%arg0: i32) -> (i32, i32) {
    %c0_i32 = arith.constant 0 : i32
    %c0_i32_0 = arith.constant 0 : i32
    %c0_i32_1 = arith.constant 0 : i32
    return %c0_i32, %c0_i32_0 : i32, i32
  }
  func.func @transform_2(%arg0: i32) -> (i32, i32) {
    %c0_i32 = arith.constant 0 : i32
    %c0_i32_0 = arith.constant 0 : i32
    %c0_i32_1 = arith.constant 0 : i32
    return %c0_i32, %c0_i32_0 : i32, i32
  }
  func.func @transform_3(%arg0: i32) -> (i32, i32) {
    %c0_i32 = arith.constant 0 : i32
    %c0_i32_0 = arith.constant 0 : i32
    return %arg0, %c0_i32 : i32, i32
  }
}

</mosaic_0001>

<bundles_post_ra>
// kernel: tpu_custom_call.1
= control target key start
LH: loop header
LB: loop body
LE: loop exit
PB: predicated region body
PF: predicated region fallthrough
CT: control target
= control target key end

     0   :  { %8 = vsyncpa [#allocation3], 0  ;;  %s245_s0 = inlined_call_operand.hbm [shape: f32[16,32], index: 0, kind: input, shape index: {}]   ;;  %s246_s1 = inlined_call_operand.vmem [shape: f32[1,32], index: 1, kind: input, shape index: {}]   ;;  %s247_s2 = inlined_call_operand.vmem [shape: f32[1,32], index: 2, kind: input, shape index: {}]   ;;  %s248_s3 = inlined_call_operand.hbm [shape: f32[16,32], index: 3, kind: output, shape index: {}]  }
   0x1   :  { %9 = vsyncpa [#allocation4], 0  ;;  %s179_s12 = smov [#allocation2]   ;;  %s131_s16 = scalar_lea.hbm %s245_s0, 256 }
   0x2   :  { %s15_s13 = sshll.u32 %s179_s12, 4  ;;  %p132_p0 = scmp.ne.s32.totalorder %s245_s0, %s131_s16  ;;  %s16_s13 = int_to_ptr.vmem [resolvable:$true] %s15_s13 }
   0x3   :  { %p135_p1 = scmp.lt.u32.totalorder %s131_s16, %s245_s0 }
   0x5   :  { %p137_p2 = pnand %p135_p1, %p132_p0 }
   0x7   :  { %140 = shalt.err (!%p137_p2)
}
   0x8   :  { %s141_s21 = scalar_lea.vmem %s16_s13, 256  ;;  %p146_p4 = scmp.lt.s32.totalorder %s16_s13, %s16_s13 }
   0x9   :  { %p142_p3 = scmp.ne.s32.totalorder %s16_s13, %s141_s21  ;;  %p147_p5 = scmp.lt.s32.totalorder %s141_s21, %s141_s21 }
   0xb   :  { %p148_p6 = por %p147_p5, %p146_p4 }
   0xd   :  { %p149_p7 = pnand %p148_p6, %p142_p3 }
   0xf   :  { %152 = shalt.err (!%p149_p7)
}
  0x10   :  { %s180_s22 = smov 128   ;;  %s181_s23 = smov 8  }
  0x11   :  { %21 = dma.hbm_to_vmem [thread:$0]  %s245_s0, 256, %s16_s13, [#allocation3], %s180_s22, %s180_s22, %s181_s23  }
  0x12   :  { %175 = dma.done.wait [#allocation3], 256  }
  0x13   :  { %176 = vsyncadd [#allocation3], 4294967040  ;;  %vm31_vm0 = vcmask 261120   ;;  %v29_v0 = vld [vmem:[#allocation2] sm:$0xff]  ;;  %v30_v1 = vld [vmem:[#allocation2 + $0x8] sm:$0xff]  ;;  %s182_s29 = smov [#allocation5]  }
  0x14   :  { %v32_v2 = vsel %vm31_vm0, %v29_v0, 0.0  ;;  %v38_v3 = vmul.f32 %v29_v0, %v29_v0  ;;  %v39_v4 = vmul.f32 %v30_v1, %v30_v1  ;;  %v35_v6 = vsel %vm31_vm0, %v30_v1, 0.0  ;;  %v117_v36 = vld [vmem:[%s246_s1] ss:$0 sm:$0xff]  ;;  %s105_s30 = sshll.u32 %s182_s29, 4  ;;  %s106_s30 = int_to_ptr.vmem [resolvable:$true] %s105_s30 }
  0x15   :  { %33 = vadd.xlane.f32.xlu0 %v32_v2  ;;  %v118_v38 = vld [vmem:[%s247_s2] ss:$0 sm:$0xff]  ;;  %s153_s1 = scalar_lea.vmem %s106_s30, 256  ;;  %p158_p9 = scmp.lt.s32.totalorder %s106_s30, %s106_s30 }
  0x16   :  { %v40_v5 = vsel %vm31_vm0, %v38_v3, 0.0  ;;  %v43_v7 = vsel %vm31_vm0, %v39_v4, 0.0  ;;  %p154_p8 = scmp.ne.s32.totalorder %s106_s30, %s153_s1  ;;  %p159_p10 = scmp.lt.s32.totalorder %s153_s1, %s153_s1 }
  0x17   :  { %41 = vadd.xlane.f32.xlu1 %v40_v5 }
  0x18   :  { %p160_p11 = por %p159_p10, %p158_p9 }
  0x19   :  { %36 = vadd.xlane.f32.xlu0 %v35_v6 }
  0x1a   :  { %p161_p12 = pnand %p160_p11, %p154_p8 }
  0x1b   :  { %44 = vadd.xlane.f32.xlu1 %v43_v7 }
  0xa2   :  { %v34_v8 = vpop.xlane.xlu0 %33 }
  0xa3   :  { %v47_v9 = vmul.f32 0.03125, %v34_v8 }
  0xa4   :  { %v42_v10 = vpop.xlane.xlu1 %41 }
  0xa5   :  { %v49_v11 = vmul.f32 %v47_v9, %v34_v8  ;;  %v78_v34 = vsub.f32 %v29_v0, %v47_v9 }
  0xa6   :  { %v37_v12 = vpop.xlane.xlu0 %36 }
  0xa7   :  { %v51_v13 = vsub.f32 %v42_v10, %v49_v11  ;;  %v48_v14 = vmul.f32 0.03125, %v37_v12 }
  0xa8   :  { %v45_v15 = vpop.xlane.xlu1 %44 }
  0xa9   :  { %v54_v16 = vmul.f32 0.032258064, %v51_v13  ;;  %v50_v17 = vmul.f32 %v48_v14, %v37_v12  ;;  %v79_v40 = vsub.f32 %v30_v1, %v48_v14 }
  0xab   :  { %v56_v18 = vmax.f32 %v54_v16, 0.0  ;;  %v52_v19 = vsub.f32 %v45_v15, %v50_v17 }
  0xad   :  { %123 = vrsqrt.f32 %v56_v18  ;;  %v55_v20 = vmul.f32 0.032258064, %v52_v19  ;;  %vm60_vm1 = vcmp.eq.f32.partialorder %v56_v18, inf  ;;  %v63_v24 = vand.u32 2147483648, %v56_v18 }
  0xae   :  { %vm62_vm2 = vcmp.eq.f32.partialorder %v56_v18, 0.0 }
  0xaf   :  { %v57_v21 = vmax.f32 %v55_v20, 0.0 }
  0xb1   :  { %125 = vrsqrt.f32 %v57_v21  ;;  %vm67_vm3 = vcmp.eq.f32.partialorder %v57_v21, inf  ;;  %v70_v30 = vand.u32 2147483648, %v57_v21  ;;  %vm69_vm4 = vcmp.eq.f32.partialorder %v57_v21, 0.0 }
  0xb7   :  { %v124_v22 = vpop.eup %123 }
  0xb8   :  { %v59_v23 = vmul.f32 %v124_v22, %v56_v18 }
  0xba   :  { %v61_v25 = vsel %vm60_vm1, %v56_v18, %v59_v23 }
  0xbb   :  { %v64_v26 = vsel %vm62_vm2, %v63_v24, %v61_v25  ;;  %v126_v27 = vpop.eup %125 }
  0xbc   :  { %v72_v28 = vadd.f32 1e-05, %v64_v26  ;;  %v66_v29 = vmul.f32 %v126_v27, %v57_v21 }
  0xbe   :  { %127 = vrcp.f32 %v72_v28  ;;  %v68_v31 = vsel %vm67_vm3, %v57_v21, %v66_v29 }
  0xbf   :  { %v71_v32 = vsel %vm69_vm4, %v70_v30, %v68_v31 }
  0xc0   :  { %v73_v33 = vadd.f32 1e-05, %v71_v32 }
  0xc2   :  { %129 = vrcp.f32 %v73_v33 }
  0xc8   :  { %v128_v35 = vpop.eup %127 }
  0xc9   :  { %v80_v37 = vmul.f32 %v128_v35, %v78_v34 }
  0xcb   :  { %v88_v39 = vmul.f32 %v117_v36, %v80_v37 }
  0xcc   :  { %v130_v41 = vpop.eup %129 }
  0xcd   :  { %v96_v42 = vadd.f32 %v118_v38, %v88_v39  ;;  %v81_v43 = vmul.f32 %v130_v41, %v79_v40 }
  0xcf   :  { %98 = vst.msk [vmem:[#allocation5] sm:$0xff] %vm31_vm0, %v96_v42  ;;  %v89_v44 = vmul.f32 %v117_v36, %v81_v43 }
  0xd1   :  { %v97_v45 = vadd.f32 %v118_v38, %v89_v44 }
  0xd3   :  { %99 = vst.msk [vmem:[#allocation5 + $0x8] sm:$0xff] %vm31_vm0, %v97_v45 }
  0xd4   :  { %164 = shalt.err (!%p161_p12)
}
  0xd5   :  { %s165_s5 = scalar_lea.hbm %s248_s3, 256 }
  0xd6   :  { %p166_p13 = scmp.ne.s32.totalorder %s248_s3, %s165_s5  ;;  %p169_p0 = scmp.lt.u32.totalorder %s165_s5, %s248_s3 }
  0xd8   :  { %p171_p1 = pnand %p169_p0, %p166_p13 }
  0xda   :  { %174 = shalt.err (!%p171_p1)
}
  0xdb   :  { %111 = dma.vmem_to_hbm [thread:$0]  %s106_s30, 256, %s248_s3, [#allocation4], %s180_s22, %s180_s22, %s181_s23  }
  0xdc   :  { %177 = dma.done.wait [#allocation4], 256  }
  0xdd   :  { %178 = vsyncadd [#allocation4], 4294967040 }
  0xde   :  { %115 = vsyncpa [#allocation3], 1 }
  0xdf   :  { %116 = vsyncpa [#allocation4], 1 }

</bundles_post_ra>
